<compile_context>
chip_gen: v5e
topology: v5e:2x2
jax: 0.10.0
libtpu: 0.0.40
codegen_flags: <defaults>
</compile_context>

<pallas_src>
import functools

import jax
import jax.numpy as jnp
from jax.experimental import pallas as pl
from jax.experimental.pallas import tpu as pltpu

IGNORE_INDEX = 255
SMOOTH = 1.0

_LANE = 128
_SUBLANE = 8


def _dice_kernel(logits_ref, targets_ref, inter_ref, union_ref, exp_ref, *,
                 fold_valid):
    # logits_ref : (1, C, TS, 128) float (f32 or bf16)
    # targets_ref: (1, TS, 128)    narrow int (uint8 or int32)
    # inter_ref / union_ref: (1, 1, C, 128) f32 accumulators, resident across
    #   the innermost "arbitrary" spatial axis; lane/chunk sums happen in JAX.
    # exp_ref    : (C, TS, 128) f32 VMEM scratch caching exp(x_c - m).
    st = pl.program_id(2)

    @pl.when(st == 0)
    def _():
        inter_ref[...] = jnp.zeros_like(inter_ref)
        union_ref[...] = jnp.zeros_like(union_ref)

    C = logits_ref.shape[1]

    t = targets_ref[0].astype(jnp.int32)                 # (TS, 128)
    valid = t != IGNORE_INDEX
    # Exact torch semantics (clamp then mask): ignore pixels map to sentinel
    # class C, so per-class `hit` needs no logical_and with `valid`.
    t_eff = jnp.where(valid, jnp.clip(t, 0, C - 1), C)

    # --- pass 1: per-pixel running max over classes (VALU only) ---
    m = logits_ref[0, 0].astype(jnp.float32)
    for c in range(1, C):
        m = jnp.maximum(m, logits_ref[0, c].astype(jnp.float32))

    # --- pass 2: e_c = exp(x_c - m) cached in VMEM, denom accumulated ---
    denom = jnp.zeros_like(m)
    for c in range(C):
        e = jnp.exp(logits_ref[0, c].astype(jnp.float32) - m)
        exp_ref[c, :, :] = e
        denom = denom + e

    # Approximate reciprocal on the (otherwise idle) EUP slot + one Newton
    # step (denom >= 1, so the refined result is ~f32-exact).
    inv = pl.reciprocal(denom, approx=True)
    inv = inv * (2.0 - denom * inv)

    zero = jnp.zeros_like(m)        # hoisted broadcasts (no CSE of broadcast)
    one = jnp.ones_like(m)
    if fold_valid:
        # No garbage tail possible: fold `probs *= valid` into the reciprocal
        # so the per-class where(valid, ...) disappears.
        inv = jnp.where(valid, inv, zero)

    # --- pass 3: fused per-class masked reductions (no one-hot temporaries) ---
    for c in range(C):
        e = exp_ref[c, :, :]
        if fold_valid:
            p = e * inv
        else:
            # Partial last block => the tail of e/inv may be stale garbage
            # (possibly NaN); the select keeps it out of every sum (padded
            # targets carry IGNORE_INDEX there, so `valid`/`hit` are False).
            p = jnp.where(valid, e * inv, zero)
        hit = t_eff == c
        inter_data = jnp.where(hit, p, zero)              # probs * one_hot
        union_data = jnp.where(hit, p + one, p)           # probs + one_hot

        # reduce sublanes only; lane/chunk reduction deferred to the JAX glue
        inter_ref[0, 0, pl.ds(c, 1), :] += jnp.sum(inter_data, axis=0,
                                                   keepdims=True)
        union_ref[0, 0, pl.ds(c, 1), :] += jnp.sum(union_data, axis=0,
                                                   keepdims=True)
    # TODO(synk): the two sublane sums could move onto the idle MXU via a
    # ones(8, TS) @ (TS, 128) dot, but a DEFAULT-precision f32 matmul may round
    # products through bf16 and endanger the 1e-4 loss tolerance, so they stay
    # on the VALU.


def _choose_spatial_tiling(s_rows, n_classes, itemsize):
    """Pick a sublane-row tile for the (S, 128) spatial layout."""
    if s_rows <= _SUBLANE:
        return s_rows                 # full extent (allowed: equals array dim)
    # ~4 MiB of logits per block -> double-buffered logits + exp scratch +
    # targets stays well under every generation's scoped-VMEM limit
    # (v5e/v6e 128 MiB physical, v7x 64 MiB) while giving well-pipelined DMAs.
    target_block_bytes = 4 * 1024 * 1024
    rows = target_block_bytes // (n_classes * _LANE * itemsize)
    rows = max(_SUBLANE, (rows // _SUBLANE) * _SUBLANE)
    return min(rows, ((s_rows + _SUBLANE - 1) // _SUBLANE) * _SUBLANE)


@functools.partial(jax.jit, static_argnames=("spatial_tile_rows",))
def dice_loss(logits_nchw, targets_nhw, *, spatial_tile_rows=None):
    """logits_nchw: (N, C, H, W) float (f32 or bf16); targets_nhw: (N, H, W) int."""
    N, C, H, W = logits_nchw.shape
    HW = H * W
    itemsize = jnp.dtype(logits_nchw.dtype).itemsize   # bf16 halves HBM traffic

    # Lane alignment only: logits are padded (one HBM copy) only when H*W is
    # not a multiple of 128; there is no pad to tile multiples any more.
    HW128 = ((HW + _LANE - 1) // _LANE) * _LANE
    S = HW128 // _LANE

    tile = _choose_spatial_tiling(S, C, itemsize)
    if spatial_tile_rows is not None and S > _SUBLANE:
        tile = max(_SUBLANE, (int(spatial_tile_rows) // _SUBLANE) * _SUBLANE)
    n_blocks = (S + tile - 1) // tile       # last logits block may be partial
    fold_valid = (S % tile == 0)            # garbage tail only when not folded

    # v7x megacore: give the grid a parallel spatial chunk axis when the batch
    # axis alone can't fill 2 TensorCores evenly. (No effect on v5e/v6e.)
    chunks = 2 if (N % 2 == 1 and n_blocks >= 2 and n_blocks % 2 == 0) else 1
    steps = n_blocks // chunks

    logits = logits_nchw.reshape(N, C, HW)
    if HW128 != HW:
        # TODO(synk): this lane-alignment pad still copies logits once in HBM;
        # it is only hit when H*W % 128 != 0 (tile-multiple padding is gone).
        logits = jnp.pad(logits, ((0, 0), (0, 0), (0, HW128 - HW)))
    logits = logits.reshape(N, C, S, _LANE)

    # Targets stay narrow (uint8 preferred); padded with IGNORE_INDEX so every
    # grid block — including the garbage tail of a partial logits block — is
    # fully masked. Targets are tiny compared to logits, so this pad is cheap.
    targets = targets_nhw.reshape(N, HW)
    if targets.dtype not in (jnp.uint8, jnp.int32):
        targets = targets.astype(jnp.int32)
    Sp = n_blocks * tile
    tpad = Sp * _LANE - HW
    if tpad:
        targets = jnp.pad(targets, ((0, 0), (0, tpad)),
                          constant_values=IGNORE_INDEX)
    targets = targets.reshape(N, Sp, _LANE)

    grid = (N, chunks, steps)
    kernel = functools.partial(_dice_kernel, fold_valid=fold_valid)

    inter, union = pl.pallas_call(
        kernel,
        grid=grid,
        in_specs=[
            pl.BlockSpec((1, C, tile, _LANE),
                         lambda n, ch, st: (n, 0, ch * steps + st, 0)),
            pl.BlockSpec((1, tile, _LANE),
                         lambda n, ch, st: (n, ch * steps + st, 0)),
        ],
        out_specs=[
            pl.BlockSpec((1, 1, C, _LANE), lambda n, ch, st: (n, ch, 0, 0)),
            pl.BlockSpec((1, 1, C, _LANE), lambda n, ch, st: (n, ch, 0, 0)),
        ],
        out_shape=[
            jax.ShapeDtypeStruct((N, chunks, C, _LANE), jnp.float32),
            jax.ShapeDtypeStruct((N, chunks, C, _LANE), jnp.float32),
        ],
        scratch_shapes=[pltpu.VMEM((C, tile, _LANE), jnp.float32)],
        compiler_params=pltpu.CompilerParams(
            dimension_semantics=("parallel", "parallel", "arbitrary"),
            vmem_limit_bytes=32 * 1024 * 1024,
        ),
    )(logits, targets)

    # Tiny (N, chunks, C) glue: chunk + lane reduction, dice, mean.
    intersection = jnp.sum(inter, axis=(1, 3))
    union_sum = jnp.sum(union, axis=(1, 3))
    dice = (intersection + SMOOTH) / (union_sum + SMOOTH)   # class_weights=None
    return 1.0 - jnp.mean(dice)


def _reference_dice_loss(logits, targets):
    """Pure-JAX reference mirroring the PyTorch forward."""
    num_classes = logits.shape[1]
    valid = targets != IGNORE_INDEX
    tclamp = jnp.clip(targets, 0, num_classes - 1)
    onehot = jax.nn.one_hot(tclamp, num_classes, dtype=jnp.float32)   # (N,H,W,C)
    onehot = jnp.transpose(onehot, (0, 3, 1, 2))                      # (N,C,H,W)
    valid_b = valid[:, None, :, :].astype(jnp.float32)
    onehot = onehot * valid_b
    probs = jax.nn.softmax(logits.astype(jnp.float32), axis=1) * valid_b
    inter = jnp.sum(probs * onehot, axis=(2, 3))
    union = jnp.sum(probs, axis=(2, 3)) + jnp.sum(onehot, axis=(2, 3))
    dice = (inter + SMOOTH) / (union + SMOOTH)
    return 1.0 - jnp.mean(dice)


if __name__ == "__main__":
    def make_inputs(key, N, C, H, W, dtype):
        k1, k2, k3 = jax.random.split(key, 3)
        logits = jax.random.normal(k1, (N, C, H, W), dtype=jnp.float32).astype(dtype)
        targets = jax.random.randint(k2, (N, H, W), 0, C, dtype=jnp.int32)
        ignore = jax.random.bernoulli(k3, 0.1, (N, H, W))
        targets = jnp.where(ignore, IGNORE_INDEX, targets).astype(jnp.uint8)
        return logits, targets

    # 1) Module-implied small shapes: lane-aligned, single block, folded mask.
    logits, targets = make_inputs(jax.random.PRNGKey(0), 2, 4, 16, 16, jnp.float32)
    loss = jax.block_until_ready(dice_loss(logits, targets))
    ref = jax.block_until_ready(_reference_dice_loss(logits, targets))
    assert jnp.allclose(loss, ref, atol=1e-4), (loss, ref)

    # 2) Non-aligned H*W: exercises the 128-lane pad, the partial (garbage
    #    tail) last spatial block, and multi-step accumulation.
    logits2, targets2 = make_inputs(jax.random.PRNGKey(1), 2, 4, 30, 60, jnp.float32)
    loss2 = jax.block_until_ready(dice_loss(logits2, targets2, spatial_tile_rows=8))
    ref2 = jax.block_until_ready(_reference_dice_loss(logits2, targets2))
    assert jnp.allclose(loss2, ref2, atol=1e-4), (loss2, ref2)

    # 3) bf16 logits with N=1: exercises the narrow-dtype logits path and the
    #    megacore spatial-chunk split (grid (1, 2, steps)).
    logits3, targets3 = make_inputs(jax.random.PRNGKey(2), 1, 4, 64, 64, jnp.bfloat16)
    loss3 = jax.block_until_ready(dice_loss(logits3, targets3, spatial_tile_rows=8))
    ref3 = jax.block_until_ready(_reference_dice_loss(logits3, targets3))
    assert jnp.allclose(loss3, ref3, atol=1e-4), (loss3, ref3)

    print("KERNEL_OK")
</pallas_src>

<mosaic_0001>
module attributes {stable_mosaic.version = 11 : i64} {
  func.func @_dice_kernel(%arg0: i32, %arg1: i32, %arg2: i32, %arg3: memref<1x4x2x128xf32, #tpu.memory_space<vmem>>, %arg4: memref<1x2x128xi8, #tpu.memory_space<vmem>>, %arg5: memref<1x1x4x128xf32, #tpu.memory_space<vmem>>, %arg6: memref<1x1x4x128xf32, #tpu.memory_space<vmem>>, %arg7: memref<4x2x128xf32, #tpu.memory_space<vmem>>) attributes {dimension_semantics = [#tpu.dimension_semantics<parallel>, #tpu.dimension_semantics<parallel>, #tpu.dimension_semantics<arbitrary>], iteration_bounds = array<i64: 2, 1, 1>, scalar_prefetch = 0 : i64, scratch_operands = 1 : i64, tpu.core_type = #tpu.core_type<tc>, window_params = [{transform_indices = @transform_0, window_bounds = array<i64: 1, 4, 2, 128>}, {transform_indices = @transform_1, window_bounds = array<i64: 1, 2, 128>}, {transform_indices = @transform_2, window_bounds = array<i64: 1, 1, 4, 128>}, {transform_indices = @transform_3, window_bounds = array<i64: 1, 1, 4, 128>}]} {
    %c0_i32 = arith.constant 0 : i32
    %0 = arith.cmpi eq, %arg2, %c0_i32 : i32
    %1 = arith.extui %0 : i1 to i32
    %c0_i32_0 = arith.constant 0 : i32
    %2 = arith.cmpi ne, %1, %c0_i32_0 : i32
    scf.if %2 {
      %cst_134 = arith.constant 0.000000e+00 : f32
      %162 = vector.broadcast %cst_134 : f32 to vector<1x1x4x128xf32>
      %c0_135 = arith.constant 0 : index
      %c0_136 = arith.constant 0 : index
      %c0_137 = arith.constant 0 : index
      %c0_138 = arith.constant 0 : index
      %163 = vector.load %arg5[%c0_135, %c0_136, %c0_137, %c0_138] : memref<1x1x4x128xf32, #tpu.memory_space<vmem>>, vector<1x1x4x128xf32>
      tpu.vector_store %arg5[%c0_135, %c0_136, %c0_137, %c0_138], %162 {strides = array<i32>} : memref<1x1x4x128xf32, #tpu.memory_space<vmem>>, vector<1x1x4x128xf32>,
      %cst_139 = arith.constant 0.000000e+00 : f32
      %164 = vector.broadcast %cst_139 : f32 to vector<1x1x4x128xf32>
      %c0_140 = arith.constant 0 : index
      %c0_141 = arith.constant 0 : index
      %c0_142 = arith.constant 0 : index
      %c0_143 = arith.constant 0 : index
      %165 = vector.load %arg6[%c0_140, %c0_141, %c0_142, %c0_143] : memref<1x1x4x128xf32, #tpu.memory_space<vmem>>, vector<1x1x4x128xf32>
      tpu.vector_store %arg6[%c0_140, %c0_141, %c0_142, %c0_143], %164 {strides = array<i32>} : memref<1x1x4x128xf32, #tpu.memory_space<vmem>>, vector<1x1x4x128xf32>,
    } else {
    }
    %c0 = arith.constant 0 : index
    %c0_1 = arith.constant 0 : index
    %c0_2 = arith.constant 0 : index
    %3 = vector.load %arg4[%c0, %c0_1, %c0_2] : memref<1x2x128xi8, #tpu.memory_space<vmem>>, vector<1x2x128xi8>
    %4 = vector.shape_cast %3 : vector<1x2x128xi8> to vector<2x128xi8>
    %5 = arith.extui %4 : vector<2x128xi8> to vector<2x128xi32>
    %c255_i32 = arith.constant 255 : i32
    %6 = vector.broadcast %c255_i32 : i32 to vector<2x128xi32>
    %7 = arith.cmpi ne, %5, %6 : vector<2x128xi32>
    %c0_i32_3 = arith.constant 0 : i32
    %c3_i32 = arith.constant 3 : i32
    %8 = vector.broadcast %c0_i32_3 : i32 to vector<2x128xi32>
    %9 = arith.maxsi %8, %5 : vector<2x128xi32>
    %10 = vector.broadcast %c3_i32 : i32 to vector<2x128xi32>
    %11 = arith.minsi %10, %9 : vector<2x128xi32>
    %c4_i32 = arith.constant 4 : i32
    %12 = vector.broadcast %c4_i32 : i32 to vector<2x128xi32>
    %13 = arith.select %7, %11, %12 : vector<2x128xi1>, vector<2x128xi32>
    %c0_4 = arith.constant 0 : index
    %c0_5 = arith.constant 0 : index
    %c0_6 = arith.constant 0 : index
    %c0_7 = arith.constant 0 : index
    %14 = vector.load %arg3[%c0_4, %c0_5, %c0_6, %c0_7] : memref<1x4x2x128xf32, #tpu.memory_space<vmem>>, vector<1x1x2x128xf32>
    %15 = vector.shape_cast %14 : vector<1x1x2x128xf32> to vector<2x128xf32>
    %c0_8 = arith.constant 0 : index
    %c1 = arith.constant 1 : index
    %c0_9 = arith.constant 0 : index
    %c0_10 = arith.constant 0 : index
    %16 = vector.load %arg3[%c0_8, %c1, %c0_9, %c0_10] : memref<1x4x2x128xf32, #tpu.memory_space<vmem>>, vector<1x1x2x128xf32>
    %17 = vector.shape_cast %16 : vector<1x1x2x128xf32> to vector<2x128xf32>
    %18 = arith.maximumf %15, %17 : vector<2x128xf32>
    %c0_11 = arith.constant 0 : index
    %c2 = arith.constant 2 : index
    %c0_12 = arith.constant 0 : index
    %c0_13 = arith.constant 0 : index
    %19 = vector.load %arg3[%c0_11, %c2, %c0_12, %c0_13] : memref<1x4x2x128xf32, #tpu.memory_space<vmem>>, vector<1x1x2x128xf32>
    %20 = vector.shape_cast %19 : vector<1x1x2x128xf32> to vector<2x128xf32>
    %21 = arith.maximumf %18, %20 : vector<2x128xf32>
    %c0_14 = arith.constant 0 : index
    %c3 = arith.constant 3 : index
    %c0_15 = arith.constant 0 : index
    %c0_16 = arith.constant 0 : index
    %22 = vector.load %arg3[%c0_14, %c3, %c0_15, %c0_16] : memref<1x4x2x128xf32, #tpu.memory_space<vmem>>, vector<1x1x2x128xf32>
    %23 = vector.shape_cast %22 : vector<1x1x2x128xf32> to vector<2x128xf32>
    %24 = arith.maximumf %21, %23 : vector<2x128xf32>
    %cst = arith.constant 0.000000e+00 : f32
    %25 = vector.broadcast %cst : f32 to vector<2x128xf32>
    %c0_17 = arith.constant 0 : index
    %c0_18 = arith.constant 0 : index
    %c0_19 = arith.constant 0 : index
    %c0_20 = arith.constant 0 : index
    %26 = vector.load %arg3[%c0_17, %c0_18, %c0_19, %c0_20] : memref<1x4x2x128xf32, #tpu.memory_space<vmem>>, vector<1x1x2x128xf32>
    %27 = vector.shape_cast %26 : vector<1x1x2x128xf32> to vector<2x128xf32>
    %28 = arith.subf %27, %24 : vector<2x128xf32>
    %29 = math.exp %28 : vector<2x128xf32>
    %c0_21 = arith.constant 0 : index
    %c0_22 = arith.constant 0 : index
    %c0_23 = arith.constant 0 : index
    %30 = vector.load %arg7[%c0_21, %c0_22, %c0_23] : memref<4x2x128xf32, #tpu.memory_space<vmem>>, vector<1x2x128xf32>
    %31 = vector.shape_cast %30 : vector<1x2x128xf32> to vector<2x128xf32>
    %32 = vector.shape_cast %29 : vector<2x128xf32> to vector<1x2x128xf32>
    tpu.vector_store %arg7[%c0_21, %c0_22, %c0_23], %32 {strides = array<i32>} : memref<4x2x128xf32, #tpu.memory_space<vmem>>, vector<1x2x128xf32>,
    %33 = arith.addf %25, %29 : vector<2x128xf32>
    %c0_24 = arith.constant 0 : index
    %c1_25 = arith.constant 1 : index
    %c0_26 = arith.constant 0 : index
    %c0_27 = arith.constant 0 : index
    %34 = vector.load %arg3[%c0_24, %c1_25, %c0_26, %c0_27] : memref<1x4x2x128xf32, #tpu.memory_space<vmem>>, vector<1x1x2x128xf32>
    %35 = vector.shape_cast %34 : vector<1x1x2x128xf32> to vector<2x128xf32>
    %36 = arith.subf %35, %24 : vector<2x128xf32>
    %37 = math.exp %36 : vector<2x128xf32>
    %c1_28 = arith.constant 1 : index
    %c0_29 = arith.constant 0 : index
    %c0_30 = arith.constant 0 : index
    %38 = vector.load %arg7[%c1_28, %c0_29, %c0_30] : memref<4x2x128xf32, #tpu.memory_space<vmem>>, vector<1x2x128xf32>
    %39 = vector.shape_cast %38 : vector<1x2x128xf32> to vector<2x128xf32>
    %40 = vector.shape_cast %37 : vector<2x128xf32> to vector<1x2x128xf32>
    tpu.vector_store %arg7[%c1_28, %c0_29, %c0_30], %40 {strides = array<i32>} : memref<4x2x128xf32, #tpu.memory_space<vmem>>, vector<1x2x128xf32>,
    %41 = arith.addf %33, %37 : vector<2x128xf32>
    %c0_31 = arith.constant 0 : index
    %c2_32 = arith.constant 2 : index
    %c0_33 = arith.constant 0 : index
    %c0_34 = arith.constant 0 : index
    %42 = vector.load %arg3[%c0_31, %c2_32, %c0_33, %c0_34] : memref<1x4x2x128xf32, #tpu.memory_space<vmem>>, vector<1x1x2x128xf32>
    %43 = vector.shape_cast %42 : vector<1x1x2x128xf32> to vector<2x128xf32>
    %44 = arith.subf %43, %24 : vector<2x128xf32>
    %45 = math.exp %44 : vector<2x128xf32>
    %c2_35 = arith.constant 2 : index
    %c0_36 = arith.constant 0 : index
    %c0_37 = arith.constant 0 : index
    %46 = vector.load %arg7[%c2_35, %c0_36, %c0_37] : memref<4x2x128xf32, #tpu.memory_space<vmem>>, vector<1x2x128xf32>
    %47 = vector.shape_cast %46 : vector<1x2x128xf32> to vector<2x128xf32>
    %48 = vector.shape_cast %45 : vector<2x128xf32> to vector<1x2x128xf32>
    tpu.vector_store %arg7[%c2_35, %c0_36, %c0_37], %48 {strides = array<i32>} : memref<4x2x128xf32, #tpu.memory_space<vmem>>, vector<1x2x128xf32>,
    %49 = arith.addf %41, %45 : vector<2x128xf32>
    %c0_38 = arith.constant 0 : index
    %c3_39 = arith.constant 3 : index
    %c0_40 = arith.constant 0 : index
    %c0_41 = arith.constant 0 : index
    %50 = vector.load %arg3[%c0_38, %c3_39, %c0_40, %c0_41] : memref<1x4x2x128xf32, #tpu.memory_space<vmem>>, vector<1x1x2x128xf32>
    %51 = vector.shape_cast %50 : vector<1x1x2x128xf32> to vector<2x128xf32>
    %52 = arith.subf %51, %24 : vector<2x128xf32>
    %53 = math.exp %52 : vector<2x128xf32>
    %c3_42 = arith.constant 3 : index
    %c0_43 = arith.constant 0 : index
    %c0_44 = arith.constant 0 : index
    %54 = vector.load %arg7[%c3_42, %c0_43, %c0_44] : memref<4x2x128xf32, #tpu.memory_space<vmem>>, vector<1x2x128xf32>
    %55 = vector.shape_cast %54 : vector<1x2x128xf32> to vector<2x128xf32>
    %56 = vector.shape_cast %53 : vector<2x128xf32> to vector<1x2x128xf32>
    tpu.vector_store %arg7[%c3_42, %c0_43, %c0_44], %56 {strides = array<i32>} : memref<4x2x128xf32, #tpu.memory_space<vmem>>, vector<1x2x128xf32>,
    %57 = arith.addf %49, %53 : vector<2x128xf32>
    %58 = tpu.reciprocal %57 {approx = true} : vector<2x128xf32> -> vector<2x128xf32>
    %59 = arith.mulf %57, %58 : vector<2x128xf32>
    %cst_45 = arith.constant 2.000000e+00 : f32
    %60 = vector.broadcast %cst_45 : f32 to vector<2x128xf32>
    %61 = arith.subf %60, %59 : vector<2x128xf32>
    %62 = arith.mulf %58, %61 : vector<2x128xf32>
    %cst_46 = arith.constant 0.000000e+00 : f32
    %63 = vector.broadcast %cst_46 : f32 to vector<2x128xf32>
    %cst_47 = arith.constant 1.000000e+00 : f32
    %64 = vector.broadcast %cst_47 : f32 to vector<2x128xf32>
    %65 = arith.select %7, %62, %63 : vector<2x128xi1>, vector<2x128xf32>
    %c0_48 = arith.constant 0 : index
    %c0_49 = arith.constant 0 : index
    %c0_50 = arith.constant 0 : index
    %66 = vector.load %arg7[%c0_48, %c0_49, %c0_50] : memref<4x2x128xf32, #tpu.memory_space<vmem>>, vector<1x2x128xf32>
    %67 = vector.shape_cast %66 : vector<1x2x128xf32> to vector<2x128xf32>
    %68 = arith.mulf %67, %65 : vector<2x128xf32>
    %c0_i32_51 = arith.constant 0 : i32
    %69 = vector.broadcast %c0_i32_51 : i32 to vector<2x128xi32>
    %70 = arith.cmpi eq, %13, %69 : vector<2x128xi32>
    %71 = arith.select %70, %68, %63 : vector<2x128xi1>, vector<2x128xf32>
    %72 = arith.addf %68, %64 : vector<2x128xf32>
    %73 = arith.select %70, %72, %68 : vector<2x128xi1>, vector<2x128xf32>
    %c0_52 = arith.constant 0 : index
    %c0_53 = arith.constant 0 : index
    %c0_54 = arith.constant 0 : index
    %c0_55 = arith.constant 0 : index
    %74 = vector.load %arg5[%c0_52, %c0_53, %c0_54, %c0_55] : memref<1x1x4x128xf32, #tpu.memory_space<vmem>>, vector<1x1x1x128xf32>
    %75 = vector.shape_cast %74 : vector<1x1x1x128xf32> to vector<1x128xf32>
    %cst_56 = arith.constant dense<0.000000e+00> : vector<128xf32>
    %76 = vector.multi_reduction <add>, %71, %cst_56 [0] : vector<2x128xf32> to vector<128xf32>
    %77 = vector.shape_cast %76 : vector<128xf32> to vector<1x128xf32>
    %78 = arith.addf %75, %77 : vector<1x128xf32>
    %c0_57 = arith.constant 0 : index
    %c0_58 = arith.constant 0 : index
    %c0_59 = arith.constant 0 : index
    %c0_60 = arith.constant 0 : index
    %79 = vector.load %arg5[%c0_57, %c0_58, %c0_59, %c0_60] : memref<1x1x4x128xf32, #tpu.memory_space<vmem>>, vector<1x1x1x128xf32>
    %80 = vector.shape_cast %79 : vector<1x1x1x128xf32> to vector<1x128xf32>
    %81 = vector.shape_cast %78 : vector<1x128xf32> to vector<1x1x1x128xf32>
    tpu.vector_store %arg5[%c0_57, %c0_58, %c0_59, %c0_60], %81 {strides = array<i32>} : memref<1x1x4x128xf32, #tpu.memory_space<vmem>>, vector<1x1x1x128xf32>,
    %c0_61 = arith.constant 0 : index
    %c0_62 = arith.constant 0 : index
    %c0_63 = arith.constant 0 : index
    %c0_64 = arith.constant 0 : index
    %82 = vector.load %arg6[%c0_61, %c0_62, %c0_63, %c0_64] : memref<1x1x4x128xf32, #tpu.memory_space<vmem>>, vector<1x1x1x128xf32>
    %83 = vector.shape_cast %82 : vector<1x1x1x128xf32> to vector<1x128xf32>
    %cst_65 = arith.constant dense<0.000000e+00> : vector<128xf32>
    %84 = vector.multi_reduction <add>, %73, %cst_65 [0] : vector<2x128xf32> to vector<128xf32>
    %85 = vector.shape_cast %84 : vector<128xf32> to vector<1x128xf32>
    %86 = arith.addf %83, %85 : vector<1x128xf32>
    %c0_66 = arith.constant 0 : index
    %c0_67 = arith.constant 0 : index
    %c0_68 = arith.constant 0 : index
    %c0_69 = arith.constant 0 : index
    %87 = vector.load %arg6[%c0_66, %c0_67, %c0_68, %c0_69] : memref<1x1x4x128xf32, #tpu.memory_space<vmem>>, vector<1x1x1x128xf32>
    %88 = vector.shape_cast %87 : vector<1x1x1x128xf32> to vector<1x128xf32>
    %89 = vector.shape_cast %86 : vector<1x128xf32> to vector<1x1x1x128xf32>
    tpu.vector_store %arg6[%c0_66, %c0_67, %c0_68, %c0_69], %89 {strides = array<i32>} : memref<1x1x4x128xf32, #tpu.memory_space<vmem>>, vector<1x1x1x128xf32>,
    %c1_70 = arith.constant 1 : index
    %c0_71 = arith.constant 0 : index
    %c0_72 = arith.constant 0 : index
    %90 = vector.load %arg7[%c1_70, %c0_71, %c0_72] : memref<4x2x128xf32, #tpu.memory_space<vmem>>, vector<1x2x128xf32>
    %91 = vector.shape_cast %90 : vector<1x2x128xf32> to vector<2x128xf32>
    %92 = arith.mulf %91, %65 : vector<2x128xf32>
    %c1_i32 = arith.constant 1 : i32
    %93 = vector.broadcast %c1_i32 : i32 to vector<2x128xi32>
    %94 = arith.cmpi eq, %13, %93 : vector<2x128xi32>
    %95 = arith.select %94, %92, %63 : vector<2x128xi1>, vector<2x128xf32>
    %96 = arith.addf %92, %64 : vector<2x128xf32>
    %97 = arith.select %94, %96, %92 : vector<2x128xi1>, vector<2x128xf32>
    %c0_73 = arith.constant 0 : index
    %c0_74 = arith.constant 0 : index
    %c1_75 = arith.constant 1 : index
    %c0_76 = arith.constant 0 : index
    %98 = vector.load %arg5[%c0_73, %c0_74, %c1_75, %c0_76] : memref<1x1x4x128xf32, #tpu.memory_space<vmem>>, vector<1x1x1x128xf32>
    %99 = vector.shape_cast %98 : vector<1x1x1x128xf32> to vector<1x128xf32>
    %cst_77 = arith.constant dense<0.000000e+00> : vector<128xf32>
    %100 = vector.multi_reduction <add>, %95, %cst_77 [0] : vector<2x128xf32> to vector<128xf32>
    %101 = vector.shape_cast %100 : vector<128xf32> to vector<1x128xf32>
    %102 = arith.addf %99, %101 : vector<1x128xf32>
    %c0_78 = arith.constant 0 : index
    %c0_79 = arith.constant 0 : index
    %c1_80 = arith.constant 1 : index
    %c0_81 = arith.constant 0 : index
    %103 = vector.load %arg5[%c0_78, %c0_79, %c1_80, %c0_81] : memref<1x1x4x128xf32, #tpu.memory_space<vmem>>, vector<1x1x1x128xf32>
    %104 = vector.shape_cast %103 : vector<1x1x1x128xf32> to vector<1x128xf32>
    %105 = vector.shape_cast %102 : vector<1x128xf32> to vector<1x1x1x128xf32>
    tpu.vector_store %arg5[%c0_78, %c0_79, %c1_80, %c0_81], %105 {strides = array<i32>} : memref<1x1x4x128xf32, #tpu.memory_space<vmem>>, vector<1x1x1x128xf32>,
    %c0_82 = arith.constant 0 : index
    %c0_83 = arith.constant 0 : index
    %c1_84 = arith.constant 1 : index
    %c0_85 = arith.constant 0 : index
    %106 = vector.load %arg6[%c0_82, %c0_83, %c1_84, %c0_85] : memref<1x1x4x128xf32, #tpu.memory_space<vmem>>, vector<1x1x1x128xf32>
    %107 = vector.shape_cast %106 : vector<1x1x1x128xf32> to vector<1x128xf32>
    %cst_86 = arith.constant dense<0.000000e+00> : vector<128xf32>
    %108 = vector.multi_reduction <add>, %97, %cst_86 [0] : vector<2x128xf32> to vector<128xf32>
    %109 = vector.shape_cast %108 : vector<128xf32> to vector<1x128xf32>
    %110 = arith.addf %107, %109 : vector<1x128xf32>
    %c0_87 = arith.constant 0 : index
    %c0_88 = arith.constant 0 : index
    %c1_89 = arith.constant 1 : index
    %c0_90 = arith.constant 0 : index
    %111 = vector.load %arg6[%c0_87, %c0_88, %c1_89, %c0_90] : memref<1x1x4x128xf32, #tpu.memory_space<vmem>>, vector<1x1x1x128xf32>
    %112 = vector.shape_cast %111 : vector<1x1x1x128xf32> to vector<1x128xf32>
    %113 = vector.shape_cast %110 : vector<1x128xf32> to vector<1x1x1x128xf32>
    tpu.vector_store %arg6[%c0_87, %c0_88, %c1_89, %c0_90], %113 {strides = array<i32>} : memref<1x1x4x128xf32, #tpu.memory_space<vmem>>, vector<1x1x1x128xf32>,
    %c2_91 = arith.constant 2 : index
    %c0_92 = arith.constant 0 : index
    %c0_93 = arith.constant 0 : index
    %114 = vector.load %arg7[%c2_91, %c0_92, %c0_93] : memref<4x2x128xf32, #tpu.memory_space<vmem>>, vector<1x2x128xf32>
    %115 = vector.shape_cast %114 : vector<1x2x128xf32> to vector<2x128xf32>
    %116 = arith.mulf %115, %65 : vector<2x128xf32>
    %c2_i32 = arith.constant 2 : i32
    %117 = vector.broadcast %c2_i32 : i32 to vector<2x128xi32>
    %118 = arith.cmpi eq, %13, %117 : vector<2x128xi32>
    %119 = arith.select %118, %116, %63 : vector<2x128xi1>, vector<2x128xf32>
    %120 = arith.addf %116, %64 : vector<2x128xf32>
    %121 = arith.select %118, %120, %116 : vector<2x128xi1>, vector<2x128xf32>
    %c0_94 = arith.constant 0 : index
    %c0_95 = arith.constant 0 : index
    %c2_96 = arith.constant 2 : index
    %c0_97 = arith.constant 0 : index
    %122 = vector.load %arg5[%c0_94, %c0_95, %c2_96, %c0_97] : memref<1x1x4x128xf32, #tpu.memory_space<vmem>>, vector<1x1x1x128xf32>
    %123 = vector.shape_cast %122 : vector<1x1x1x128xf32> to vector<1x128xf32>
    %cst_98 = arith.constant dense<0.000000e+00> : vector<128xf32>
    %124 = vector.multi_reduction <add>, %119, %cst_98 [0] : vector<2x128xf32> to vector<128xf32>
    %125 = vector.shape_cast %124 : vector<128xf32> to vector<1x128xf32>
    %126 = arith.addf %123, %125 : vector<1x128xf32>
    %c0_99 = arith.constant 0 : index
    %c0_100 = arith.constant 0 : index
    %c2_101 = arith.constant 2 : index
    %c0_102 = arith.constant 0 : index
    %127 = vector.load %arg5[%c0_99, %c0_100, %c2_101, %c0_102] : memref<1x1x4x128xf32, #tpu.memory_space<vmem>>, vector<1x1x1x128xf32>
    %128 = vector.shape_cast %127 : vector<1x1x1x128xf32> to vector<1x128xf32>
    %129 = vector.shape_cast %126 : vector<1x128xf32> to vector<1x1x1x128xf32>
    tpu.vector_store %arg5[%c0_99, %c0_100, %c2_101, %c0_102], %129 {strides = array<i32>} : memref<1x1x4x128xf32, #tpu.memory_space<vmem>>, vector<1x1x1x128xf32>,
    %c0_103 = arith.constant 0 : index
    %c0_104 = arith.constant 0 : index
    %c2_105 = arith.constant 2 : index
    %c0_106 = arith.constant 0 : index
    %130 = vector.load %arg6[%c0_103, %c0_104, %c2_105, %c0_106] : memref<1x1x4x128xf32, #tpu.memory_space<vmem>>, vector<1x1x1x128xf32>
    %131 = vector.shape_cast %130 : vector<1x1x1x128xf32> to vector<1x128xf32>
    %cst_107 = arith.constant dense<0.000000e+00> : vector<128xf32>
    %132 = vector.multi_reduction <add>, %121, %cst_107 [0] : vector<2x128xf32> to vector<128xf32>
    %133 = vector.shape_cast %132 : vector<128xf32> to vector<1x128xf32>
    %134 = arith.addf %131, %133 : vector<1x128xf32>
    %c0_108 = arith.constant 0 : index
    %c0_109 = arith.constant 0 : index
    %c2_110 = arith.constant 2 : index
    %c0_111 = arith.constant 0 : index
    %135 = vector.load %arg6[%c0_108, %c0_109, %c2_110, %c0_111] : memref<1x1x4x128xf32, #tpu.memory_space<vmem>>, vector<1x1x1x128xf32>
    %136 = vector.shape_cast %135 : vector<1x1x1x128xf32> to vector<1x128xf32>
    %137 = vector.shape_cast %134 : vector<1x128xf32> to vector<1x1x1x128xf32>
    tpu.vector_store %arg6[%c0_108, %c0_109, %c2_110, %c0_111], %137 {strides = array<i32>} : memref<1x1x4x128xf32, #tpu.memory_space<vmem>>, vector<1x1x1x128xf32>,
    %c3_112 = arith.constant 3 : index
    %c0_113 = arith.constant 0 : index
    %c0_114 = arith.constant 0 : index
    %138 = vector.load %arg7[%c3_112, %c0_113, %c0_114] : memref<4x2x128xf32, #tpu.memory_space<vmem>>, vector<1x2x128xf32>
    %139 = vector.shape_cast %138 : vector<1x2x128xf32> to vector<2x128xf32>
    %140 = arith.mulf %139, %65 : vector<2x128xf32>
    %c3_i32_115 = arith.constant 3 : i32
    %141 = vector.broadcast %c3_i32_115 : i32 to vector<2x128xi32>
    %142 = arith.cmpi eq, %13, %141 : vector<2x128xi32>
    %143 = arith.select %142, %140, %63 : vector<2x128xi1>, vector<2x128xf32>
    %144 = arith.addf %140, %64 : vector<2x128xf32>
    %145 = arith.select %142, %144, %140 : vector<2x128xi1>, vector<2x128xf32>
    %c0_116 = arith.constant 0 : index
    %c0_117 = arith.constant 0 : index
    %c3_118 = arith.constant 3 : index
    %c0_119 = arith.constant 0 : index
    %146 = vector.load %arg5[%c0_116, %c0_117, %c3_118, %c0_119] : memref<1x1x4x128xf32, #tpu.memory_space<vmem>>, vector<1x1x1x128xf32>
    %147 = vector.shape_cast %146 : vector<1x1x1x128xf32> to vector<1x128xf32>
    %cst_120 = arith.constant dense<0.000000e+00> : vector<128xf32>
    %148 = vector.multi_reduction <add>, %143, %cst_120 [0] : vector<2x128xf32> to vector<128xf32>
    %149 = vector.shape_cast %148 : vector<128xf32> to vector<1x128xf32>
    %150 = arith.addf %147, %149 : vector<1x128xf32>
    %c0_121 = arith.constant 0 : index
    %c0_122 = arith.constant 0 : index
    %c3_123 = arith.constant 3 : index
    %c0_124 = arith.constant 0 : index
    %151 = vector.load %arg5[%c0_121, %c0_122, %c3_123, %c0_124] : memref<1x1x4x128xf32, #tpu.memory_space<vmem>>, vector<1x1x1x128xf32>
    %152 = vector.shape_cast %151 : vector<1x1x1x128xf32> to vector<1x128xf32>
    %153 = vector.shape_cast %150 : vector<1x128xf32> to vector<1x1x1x128xf32>
    tpu.vector_store %arg5[%c0_121, %c0_122, %c3_123, %c0_124], %153 {strides = array<i32>} : memref<1x1x4x128xf32, #tpu.memory_space<vmem>>, vector<1x1x1x128xf32>,
    %c0_125 = arith.constant 0 : index
    %c0_126 = arith.constant 0 : index
    %c3_127 = arith.constant 3 : index
    %c0_128 = arith.constant 0 : index
    %154 = vector.load %arg6[%c0_125, %c0_126, %c3_127, %c0_128] : memref<1x1x4x128xf32, #tpu.memory_space<vmem>>, vector<1x1x1x128xf32>
    %155 = vector.shape_cast %154 : vector<1x1x1x128xf32> to vector<1x128xf32>
    %cst_129 = arith.constant dense<0.000000e+00> : vector<128xf32>
    %156 = vector.multi_reduction <add>, %145, %cst_129 [0] : vector<2x128xf32> to vector<128xf32>
    %157 = vector.shape_cast %156 : vector<128xf32> to vector<1x128xf32>
    %158 = arith.addf %155, %157 : vector<1x128xf32>
    %c0_130 = arith.constant 0 : index
    %c0_131 = arith.constant 0 : index
    %c3_132 = arith.constant 3 : index
    %c0_133 = arith.constant 0 : index
    %159 = vector.load %arg6[%c0_130, %c0_131, %c3_132, %c0_133] : memref<1x1x4x128xf32, #tpu.memory_space<vmem>>, vector<1x1x1x128xf32>
    %160 = vector.shape_cast %159 : vector<1x1x1x128xf32> to vector<1x128xf32>
    %161 = vector.shape_cast %158 : vector<1x128xf32> to vector<1x1x1x128xf32>
    tpu.vector_store %arg6[%c0_130, %c0_131, %c3_132, %c0_133], %161 {strides = array<i32>} : memref<1x1x4x128xf32, #tpu.memory_space<vmem>>, vector<1x1x1x128xf32>,
    return
  }
  func.func @transform_0(%arg0: i32, %arg1: i32, %arg2: i32) -> (i32, i32, i32, i32) {
    %c1_i32 = arith.constant 1 : i32
    %0 = arith.muli %arg1, %c1_i32 : i32
    %1 = arith.addi %0, %arg2 : i32
    %c0_i32 = arith.constant 0 : i32
    %c0_i32_0 = arith.constant 0 : i32
    %c0_i32_1 = arith.constant 0 : i32
    return %arg0, %c0_i32, %1, %c0_i32_0 : i32, i32, i32, i32
  }
  func.func @transform_1(%arg0: i32, %arg1: i32, %arg2: i32) -> (i32, i32, i32) {
    %c1_i32 = arith.constant 1 : i32
    %0 = arith.muli %arg1, %c1_i32 : i32
    %1 = arith.addi %0, %arg2 : i32
    %c0_i32 = arith.constant 0 : i32
    %c0_i32_0 = arith.constant 0 : i32
    return %arg0, %1, %c0_i32 : i32, i32, i32
  }
  func.func @transform_2(%arg0: i32, %arg1: i32, %arg2: i32) -> (i32, i32, i32, i32) {
    %c0_i32 = arith.constant 0 : i32
    %c0_i32_0 = arith.constant 0 : i32
    %c0_i32_1 = arith.constant 0 : i32
    return %arg0, %arg1, %c0_i32, %c0_i32_0 : i32, i32, i32, i32
  }
  func.func @transform_3(%arg0: i32, %arg1: i32, %arg2: i32) -> (i32, i32, i32, i32) {
    %c0_i32 = arith.constant 0 : i32
    %c0_i32_0 = arith.constant 0 : i32
    %c0_i32_1 = arith.constant 0 : i32
    return %arg0, %arg1, %c0_i32, %c0_i32_0 : i32, i32, i32, i32
  }
}

</mosaic_0001>

<bundles_post_ra>
// kernel: dice_loss.1
= control target key start
LH: loop header
LB: loop body
LE: loop exit
PB: predicated region body
PF: predicated region fallthrough
CT: control target
= control target key end

     0   :  { %s657_s12 = smov 0   ;;  %s659_s13 = smov 0   ;;  %s739_s0 = inlined_call_operand.vmem [shape: f32[2,4,2,128], index: 0, kind: input, shape index: {}]   ;;  %s740_s1 = inlined_call_operand.vmem [shape: u8[2,2,128], index: 1, kind: input, shape index: {}]   ;;  %s741_s2 = inlined_call_operand.vmem [shape: f32[2,1,4,128], index: 2, kind: output, shape index: {0}]   ;;  %s742_s3 = inlined_call_operand.vmem [shape: f32[2,1,4,128], index: 3, kind: output, shape index: {1}]  }
   0x1   :  { %s661_s14 = smov 0  }
   0x2 LB: > { %s33_s15 = sadd.s32 1, %s630_s13  ;;  %p563_p0 = scmp.ge.s32.totalorder %s634_s14, 1  ;;  %s634_s14 = sphi %s661_s14, %s14_s14   ;;  %s630_s13 = sphi %s659_s13, %s744_s13   ;;  %s626_s12 = sphi %s657_s12, %s743_s12  }
   0x3   : > { %p35_p1 = scmp.ge.s32.totalorder %s33_s15, 2  ;;  %p189_p2 = scmp.lt.s32.totalorder %s634_s14, 3 }
   0x5   : > { %s746_s15 = smov (%p35_p1, %s33_s15), 0  ;;  %p190_p3 = pnand %p563_p0, %p189_p2 }
   0x6   : > { %p234_p4 = scmp.lt.s32.totalorder (!%p190_p3), %s626_s12, 1 }
   0x7   : > { %193 = sbr.rel (%p190_p3) target bundleno = 83 (0x53), region = 28 }
   0xc   : > { %s748_s12 = smov (!%p234_p4, %s626_s12), 1  ;;  %v636_v10 = vmov 0.0   ;;  %vm328_vm4 = vcmask 1041408  }
   0xd   : > { %s576_s16 = sshll.u32 %s748_s12, 3  ;;  %s566_s20 = sshll.u32 %s748_s12, 2 }
   0xe   : > { %s241_s19 = scalar_lea.vmem %s739_s0, %s576_s16  ;;  %s685_s23 = scalar_lea.vmem %s741_s2, %s566_s20 }
   0xf   : > { %v280_v0 = vld [vmem:[%s241_s19] sm:$0x3]  ;;  %v568_v1 = vld [vmem:[%s241_s19 + $0x2] sm:$0x3]  ;;  %v569_v2 = vld [vmem:[%s241_s19 + $0x4] sm:$0x3]  ;;  %s690_s26 = scalar_lea.vmem %s742_s3, %s566_s20  ;;  %s249_s29 = scalar_lea.vmem %s740_s1, %s748_s12 }
  0x10   : > { %v283_v3 = vmax.f32 %v280_v0, %v568_v1  ;;  %v570_v4 = vld [vmem:[%s241_s19 + $0x6] sm:$0x3]  ;;  %v571_v6 = vld [vmem:[%s241_s19 + $0x2] sm:$0x3]  ;;  %v572_v7 = vld [vmem:[%s241_s19 + $0x4] sm:$0x3] }
  0x11   : > { %v573_v8 = vld [vmem:[%s241_s19 + $0x6] sm:$0x3]  ;;  %269 = vst [vmem:[%s685_s23] sm:$0xf] %v636_v10  ;;  %v271_v19 = vld [vmem:[%s249_s29] sm:$0x1] }
  0x12   : > { %v286_v5 = vmax.f32 %v283_v3, %v569_v2  ;;  %270 = vst [vmem:[%s690_s26] sm:$0xf] %v636_v10  ;;  %v272_v20 = vunpack.c.0.s8 %v271_v19 }
  0x14   : > { %v289_v9 = vmax.f32 %v286_v5, %v570_v4  ;;  %v273_v23 = vand.u32 255, %v272_v20 }
  0x16   : > { %v290_v11 = vsub.f32 %v280_v0, %v289_v9  ;;  %v296_v12 = vsub.f32 %v571_v6, %v289_v9  ;;  %v303_v13 = vsub.f32 %v572_v7, %v289_v9  ;;  %v310_v14 = vsub.f32 %v573_v8, %v289_v9 }
  0x17   : > { %vm275_vm0 = vcmp.gt.s32.totalorder %v273_v23, 0  ;;  %vm274_vm2 = vcmp.ne.s32.totalorder %v273_v23, 255 }
  0x18   : > { %v291_v15 = vmul.f32 1.442695, %v290_v11  ;;  %v297_v16 = vmul.f32 1.442695, %v296_v12  ;;  %v304_v17 = vmul.f32 1.442695, %v303_v13 }
  0x19   : > { %v311_v18 = vmul.f32 1.442695, %v310_v14  ;;  %v276_v29 = vsel %vm275_vm0, %v273_v23, 0 }
  0x1a   : > { %602 = vpow2.f32 %v291_v15  ;;  %vm277_vm1 = vcmp.lt.s32.totalorder %v276_v29, 3 }
  0x1b   : > { %604 = vpow2.f32 %v297_v16  ;;  %v278_v31 = vsel %vm277_vm1, %v276_v29, 3 }
  0x1c   : > { %606 = vpow2.f32 %v304_v17  ;;  %v279_v34 = vsel %vm274_vm2, %v278_v31, 4 }
  0x1d   : > { %608 = vpow2.f32 %v311_v18  ;;  %vm323_vm3 = vcmp.eq.s32.totalorder %v279_v34, 0  ;;  %vm350_vm5 = vcmp.eq.s32.totalorder %v279_v34, 1  ;;  %vm376_vm6 = vcmp.eq.s32.totalorder %v279_v34, 2 }
  0x1e   : > { %vm402_vm7 = vcmp.eq.s32.totalorder %v279_v34, 3 }
  0x20   : > { %v603_v21 = vpop.eup %602 }
  0x21   : > { %v605_v22 = vpop.eup %604  ;;  %293 = vst [vmem:[#allocation2] sm:$0x3] %v603_v21 }
  0x22   : > { %v607_v24 = vpop.eup %606  ;;  %300 = vst [vmem:[#allocation2 + $0x2] sm:$0x3] %v605_v22  ;;  %v301_v25 = vadd.f32 %v605_v22, %v603_v21  ;;  %v327_v21 = vld [vmem:[%s685_s23] sm:$0x1] }
  0x23   : > { %v609_v26 = vpop.eup %608  ;;  %307 = vst [vmem:[#allocation2 + $0x4] sm:$0x3] %v607_v24 }
  0x24   : > { %v308_v27 = vadd.f32 %v607_v24, %v301_v25  ;;  %314 = vst [vmem:[#allocation2 + $0x6] sm:$0x3] %v609_v26 }
  0x26   : > { %v315_v28 = vadd.f32 %v609_v26, %v308_v27  ;;  %v354_v26 = vld [vmem:[%s685_s23 + $0x1] sm:$0x1]  ;;  %v380_v27 = vld [vmem:[%s685_s23 + $0x2] sm:$0x1] }
  0x28   : > { %610 = vrcp.f32 %v315_v28  ;;  %v321_v35 = vld [vmem:[#allocation2] sm:$0x3] }
  0x29   : > { %v348_v37 = vld [vmem:[#allocation2 + $0x2] sm:$0x3] }
  0x2a   : > { %v374_v38 = vld [vmem:[#allocation2 + $0x4] sm:$0x3] }
  0x2b   : > { %v400_v39 = vld [vmem:[#allocation2 + $0x6] sm:$0x3] }
  0x2e   : > { %v611_v30 = vpop.eup %610 }
  0x2f   : > { %v317_v32 = vmul.f32 %v611_v30, %v315_v28  ;;  %v406_v28 = vld [vmem:[%s685_s23 + $0x3] sm:$0x1] }
  0x31   : > { %v318_v33 = vsub.f32 2.0, %v317_v32 }
  0x33   : > { %v319_v36 = vmul.f32 %v611_v30, %v318_v33 }
  0x35   : > { %v320_v40 = vsel %vm274_vm2, %v319_v36, 0.0 }
  0x36   : > { %v322_v41 = vmul.f32 %v321_v35, %v320_v40  ;;  %v349_v42 = vmul.f32 %v348_v37, %v320_v40  ;;  %v375_v43 = vmul.f32 %v374_v38, %v320_v40  ;;  %v401_v44 = vmul.f32 %v400_v39, %v320_v40 }
  0x38   : > { %v324_v45 = vsel %vm323_vm3, %v322_v41, 0.0  ;;  %v351_v46 = vsel %vm350_vm5, %v349_v42, 0.0  ;;  %v377_v47 = vsel %vm376_vm6, %v375_v43, 0.0  ;;  %v403_v48 = vsel %vm402_vm7, %v401_v44, 0.0 }
  0x39   : > { %v329_v49 = vsel %vm328_vm4, %v324_v45, 0.0  ;;  %v355_v50 = vsel %vm328_vm4, %v351_v46, 0.0  ;;  %v381_v51 = vsel %vm328_vm4, %v377_v47, 0.0  ;;  %v407_v52 = vsel %vm328_vm4, %v403_v48, 0.0 }
  0x3a   : > { %v330_v53 = vrot.slane %v329_v49, 4  ;;  %v356_v54 = vrot.slane %v355_v50, 4  ;;  %v382_v55 = vrot.slane %v381_v51, 4  ;;  %v408_v56 = vrot.slane %v407_v52, 4 }
  0x3b   : > { %v325_v57 = vadd.f32 1.0, %v322_v41  ;;  %v352_v58 = vadd.f32 1.0, %v349_v42  ;;  %v378_v59 = vadd.f32 1.0, %v375_v43  ;;  %v404_v60 = vadd.f32 1.0, %v401_v44 }
  0x3c   : > { %v331_v61 = vadd.f32 %v330_v53, %v329_v49  ;;  %v357_v62 = vadd.f32 %v356_v54, %v355_v50  ;;  %v383_v63 = vadd.f32 %v382_v55, %v381_v51  ;;  %v409_v0 = vadd.f32 %v408_v56, %v407_v52  ;;  %v338_v49 = vld [vmem:[%s690_s26] sm:$0x1]  ;;  %v364_v54 = vld [vmem:[%s690_s26 + $0x1] sm:$0x1]  ;;  %v390_v55 = vld [vmem:[%s690_s26 + $0x2] sm:$0x1] }
  0x3d   : > { %v326_v1 = vsel %vm323_vm3, %v325_v57, %v322_v41  ;;  %v353_v2 = vsel %vm350_vm5, %v352_v58, %v349_v42  ;;  %v379_v3 = vsel %vm376_vm6, %v378_v59, %v375_v43  ;;  %v405_v4 = vsel %vm402_vm7, %v404_v60, %v401_v44  ;;  %v416_v59 = vld [vmem:[%s690_s26 + $0x3] sm:$0x1] }
  0x3e   : > { %v332_v5 = vrot.slane %v331_v61, 2  ;;  %v358_v6 = vrot.slane %v357_v62, 2  ;;  %v384_v7 = vrot.slane %v383_v63, 2  ;;  %v410_v8 = vrot.slane %v409_v0, 2 }
  0x3f   : > { %v339_v9 = vsel %vm328_vm4, %v326_v1, 0.0  ;;  %v365_v10 = vsel %vm328_vm4, %v353_v2, 0.0  ;;  %v391_v11 = vsel %vm328_vm4, %v379_v3, 0.0  ;;  %v417_v12 = vsel %vm328_vm4, %v405_v4, 0.0 }
  0x40   : > { %v333_v13 = vadd.f32 %v332_v5, %v331_v61  ;;  %v359_v14 = vadd.f32 %v358_v6, %v357_v62  ;;  %v385_v15 = vadd.f32 %v384_v7, %v383_v63  ;;  %v411_v16 = vadd.f32 %v410_v8, %v409_v0 }
  0x41   : > { %v340_v17 = vrot.slane %v339_v9, 4  ;;  %v366_v18 = vrot.slane %v365_v10, 4  ;;  %v392_v19 = vrot.slane %v391_v11, 4  ;;  %v418_v20 = vrot.slane %v417_v12, 4 }
  0x42   : > { %v334_v22 = vrot.slane %v333_v13, 1  ;;  %v360_v23 = vrot.slane %v359_v14, 1  ;;  %v386_v24 = vrot.slane %v385_v15, 1  ;;  %v412_v25 = vrot.slane %v411_v16, 1 }
  0x43   : > { %v341_v29 = vadd.f32 %v340_v17, %v339_v9  ;;  %v367_v30 = vadd.f32 %v366_v18, %v365_v10  ;;  %v393_v31 = vadd.f32 %v392_v19, %v391_v11  ;;  %v419_v32 = vadd.f32 %v418_v20, %v417_v12 }
  0x44   : > { %v335_v33 = vadd.f32 %v334_v22, %v333_v13  ;;  %v361_v34 = vadd.f32 %v360_v23, %v359_v14  ;;  %v387_v35 = vadd.f32 %v386_v24, %v385_v15  ;;  %v413_v36 = vadd.f32 %v412_v25, %v411_v16 }
  0x45   : > { %v342_v37 = vrot.slane %v341_v29, 2  ;;  %v368_v38 = vrot.slane %v367_v30, 2  ;;  %v394_v39 = vrot.slane %v393_v31, 2  ;;  %v420_v40 = vrot.slane %v419_v32, 2 }
  0x46   : > { %v336_v41 = vadd.f32 %v335_v33, %v327_v21  ;;  %v362_v42 = vadd.f32 %v361_v34, %v354_v26  ;;  %v388_v43 = vadd.f32 %v387_v35, %v380_v27  ;;  %v414_v44 = vadd.f32 %v413_v36, %v406_v28 }
  0x47   : > { %v343_v45 = vadd.f32 %v342_v37, %v341_v29  ;;  %v369_v46 = vadd.f32 %v368_v38, %v367_v30  ;;  %v395_v47 = vadd.f32 %v394_v39, %v393_v31  ;;  %v421_v48 = vadd.f32 %v420_v40, %v419_v32 }
  0x48   : > { %337 = vst [vmem:[%s685_s23] sm:$0x1] %v336_v41 }
  0x49   : > { %363 = vst [vmem:[%s685_s23 + $0x1] sm:$0x1] %v362_v42  ;;  %v344_v50 = vrot.slane %v343_v45, 1  ;;  %v370_v51 = vrot.slane %v369_v46, 1  ;;  %v396_v52 = vrot.slane %v395_v47, 1  ;;  %v422_v53 = vrot.slane %v421_v48, 1 }
  0x4a   : > { %389 = vst [vmem:[%s685_s23 + $0x2] sm:$0x1] %v388_v43 }
  0x4b   : > { %415 = vst [vmem:[%s685_s23 + $0x3] sm:$0x1] %v414_v44  ;;  %v345_v56 = vadd.f32 %v344_v50, %v343_v45  ;;  %v371_v57 = vadd.f32 %v370_v51, %v369_v46  ;;  %v397_v58 = vadd.f32 %v396_v52, %v395_v47  ;;  %v423_v60 = vadd.f32 %v422_v53, %v421_v48 }
  0x4d   : > { %v346_v61 = vadd.f32 %v345_v56, %v338_v49  ;;  %v372_v62 = vadd.f32 %v371_v57, %v364_v54  ;;  %v398_v63 = vadd.f32 %v397_v58, %v390_v55  ;;  %v424_v0 = vadd.f32 %v423_v60, %v416_v59 }
  0x4f   : > { %347 = vst [vmem:[%s690_s26] sm:$0x1] %v346_v61 }
  0x50   : > { %373 = vst [vmem:[%s690_s26 + $0x1] sm:$0x1] %v372_v62 }
  0x51   : > { %399 = vst [vmem:[%s690_s26 + $0x2] sm:$0x1] %v398_v63 }
  0x52   : > { %425 = vst [vmem:[%s690_s26 + $0x3] sm:$0x1] %v424_v0 }
  0x53 PF: > { %s14_s14 = sadd.s32 1, %s634_s14   ;;  %s743_s12 = smov %s630_s13 }
  0x54   : > { %p11_p5 = scmp.ge.s32.totalorder %s14_s14, 4   ;;  %s744_s13 = smov %s746_s15 }
  0x56   :  { %13 = sbr.rel (!%p11_p5) target bundleno = 2 (0x2), region = 83 }

</bundles_post_ra>
